<compile_context>
chip_gen: v6e
topology: v6e:2x2x1
jax: 0.10.0
libtpu: 0.0.40
codegen_flags: <defaults>
</compile_context>

<pallas_src>
import functools

import jax
import jax.numpy as jnp
from jax import lax
from jax.experimental import pallas as pl
from jax.experimental.pallas import tpu as pltpu


def _lstm_kernel(x_ref, wxT_ref, bias_ref, whT_ref, woT_ref, bo_ref,
                 out_ref, *, T, B):
    # x_ref:    (T*B, D)     time-major rows (row = t*B + b)
    # wxT_ref:  (D, H)       bias_ref: (1, H) == bx + bh (folded)
    # whT_ref:  (H, H)
    # woT_ref:  (H, O_pad)   bo_ref: (1, O_pad)   (zero-padded to 128 lanes)
    # out_ref:  (T*B, O_pad) time-major rows

    # 1) Non-recurrent input projection for ALL timesteps at once, with both
    #    biases folded in (single broadcast+add instead of T of them).
    px = (jnp.dot(x_ref[...], wxT_ref[...],
                  preferred_element_type=jnp.float32) + bias_ref[...])

    whT = whT_ref[...]
    H = whT.shape[0]

    h = jnp.zeros((B, H), jnp.float32)
    c = jnp.zeros((B, H), jnp.float32)

    # 2) Serial recurrence (inherently sequential) — only h @ Wh^T per step.
    #    Hidden states stay register-resident; no per-step VMEM stores.
    hs = []
    for t in range(T):
        pre = (jnp.dot(h, whT, preferred_element_type=jnp.float32)
               + px[t * B:(t + 1) * B, :])
        gate = jax.nn.sigmoid(pre)          # i == f == o (module quirk)
        g = jnp.tanh(pre)
        c = gate * (c + g)                  # factored form of f*c + i*g
        h = gate * jnp.tanh(c)
        hs.append(h)

    # 3) Output projection hoisted out of the loop: one matmul over all steps,
    #    lane-dense (O padded to 128) unmasked store.
    hall = jnp.concatenate(hs, axis=0)      # (T*B, H), register-resident
    out_ref[...] = (jnp.dot(hall, woT_ref[...],
                            preferred_element_type=jnp.float32)
                    + bo_ref[...]).astype(out_ref.dtype)


def lstmnet_forward(x, params):
    """x: (B, T, D_in) float32.  Returns (T*B, O) in batch-major row order
    (row = b*T + t), matching the PyTorch module's output."""
    wx, bx, wh, bh, wo, bo = params
    B, T, D = x.shape
    H = wh.shape[0]
    O = wo.shape[0]

    # Pad batch to a multiple of 8 so per-step tiles are sublane-aligned.
    B_pad = ((B + 7) // 8) * 8
    if B_pad != B:
        x = jnp.pad(x, ((0, B_pad - B), (0, 0), (0, 0)))

    # Time-major flattened input: row t*B_pad + b  ==  x[b, t].
    x2d = jnp.transpose(x, (1, 0, 2)).reshape(T * B_pad, D)

    # Pre-transpose weights once in the wrapper (no in-kernel .T).
    wxT = wx.T                                  # (D, H)
    whT = wh.T                                  # (H, H)
    bias = (bx + bh).reshape(1, H)              # bh folded into input bias

    # Lane-dense output: pad Wo^T / bo to 128 output columns (zero-fill).
    O_pad = ((O + 127) // 128) * 128
    woT_pad = jnp.zeros((H, O_pad), jnp.float32).at[:, :O].set(wo.T)
    bo_pad = jnp.zeros((1, O_pad), jnp.float32).at[:, :O].set(bo.reshape(1, O))

    kernel = functools.partial(_lstm_kernel, T=T, B=B_pad)

    out_tm = pl.pallas_call(
        kernel,
        out_shape=jax.ShapeDtypeStruct((T * B_pad, O_pad), jnp.float32),
        grid_spec=pltpu.PrefetchScalarGridSpec(
            num_scalar_prefetch=0,
            grid=(1,),
            in_specs=[
                pl.BlockSpec((T * B_pad, D), lambda i: (0, 0)),   # x (time-major)
                pl.BlockSpec((D, H), lambda i: (0, 0)),           # Wx^T
                pl.BlockSpec((1, H), lambda i: (0, 0)),           # bx + bh
                pl.BlockSpec((H, H), lambda i: (0, 0)),           # Wh^T
                pl.BlockSpec((H, O_pad), lambda i: (0, 0)),       # Wo^T (padded)
                pl.BlockSpec((1, O_pad), lambda i: (0, 0)),       # bo   (padded)
            ],
            out_specs=pl.BlockSpec((T * B_pad, O_pad), lambda i: (0, 0)),
        ),
        compiler_params=pltpu.CompilerParams(
            dimension_semantics=("arbitrary",)),
    )(x2d, wxT, bias, whT, woT_pad, bo_pad)

    # PyTorch: view(T,B,O).transpose(0,1).contiguous().view(T*B, O).
    # Drop batch/output padding and reorder the tiny (T, B, O) result.
    out = jnp.transpose(out_tm.reshape(T, B_pad, O_pad)[:, :B, :O],
                        (1, 0, 2)).reshape(T * B, O)
    return out


def ref_forward(x, params):
    """Pure-JAX reference implementing the PyTorch semantics."""
    wx, bx, wh, bh, wo, bo = params
    B, T, D = x.shape
    H = wh.shape[0]
    x_tm = jnp.transpose(x, (1, 0, 2))

    def step(carry, xt):
        h, c = carry
        pre = h @ wh.T + bh + xt @ wx.T + bx
        gate = jax.nn.sigmoid(pre)
        g = jnp.tanh(pre)
        c = gate * c + gate * g
        h = gate * jnp.tanh(c)
        return (h, c), h

    (_, _), hs = lax.scan(step, (jnp.zeros((B, H)), jnp.zeros((B, H))), x_tm)
    out_tm = hs @ wo.T + bo                      # (T, B, O)
    return jnp.transpose(out_tm, (1, 0, 2)).reshape(T * B, -1)


def init_params(key, input_dim, hidden_dim, output_dim):
    ks = jax.random.split(key, 6)

    def unif(k, shape, fan_in):
        bound = 1.0 / jnp.sqrt(fan_in)
        return jax.random.uniform(k, shape, jnp.float32, -bound, bound)

    wx = unif(ks[0], (hidden_dim, input_dim), input_dim)
    bx = unif(ks[1], (hidden_dim,), input_dim)
    wh = unif(ks[2], (hidden_dim, hidden_dim), hidden_dim)
    bh = unif(ks[3], (hidden_dim,), hidden_dim)
    wo = unif(ks[4], (output_dim, hidden_dim), hidden_dim)
    bo = unif(ks[5], (output_dim,), hidden_dim)
    return (wx, bx, wh, bh, wo, bo)


if __name__ == "__main__":
    # B chosen as a multiple of 8 (sublane-aligned); kernel pads otherwise.
    B, T, D_IN, H, O = 8, 8, 16, 32, 2
    key = jax.random.PRNGKey(0)
    kx, kp = jax.random.split(key)
    x = jax.random.normal(kx, (B, T, D_IN), jnp.float32)
    params = init_params(kp, D_IN, H, O)

    out = jax.block_until_ready(lstmnet_forward(x, params))
    ref = jax.block_until_ready(ref_forward(x, params))

    assert out.shape == (T * B, O), out.shape
    assert jnp.allclose(out, ref, atol=1e-5, rtol=1e-5), \
        float(jnp.max(jnp.abs(out - ref)))
    print("KERNEL_OK")
</pallas_src>

<mosaic_0001>
module attributes {stable_mosaic.version = 11 : i64} {
  func.func @_lstm_kernel(%arg0: i32, %arg1: memref<64x16xf32, #tpu.memory_space<vmem>>, %arg2: memref<16x32xf32, #tpu.memory_space<vmem>>, %arg3: memref<1x32xf32, #tpu.memory_space<vmem>>, %arg4: memref<32x32xf32, #tpu.memory_space<vmem>>, %arg5: memref<32x128xf32, #tpu.memory_space<vmem>>, %arg6: memref<1x128xf32, #tpu.memory_space<vmem>>, %arg7: memref<64x128xf32, #tpu.memory_space<vmem>>) attributes {dimension_semantics = [#tpu.dimension_semantics<arbitrary>], iteration_bounds = array<i64: 1>, scalar_prefetch = 0 : i64, scratch_operands = 0 : i64, tpu.core_type = #tpu.core_type<tc>, window_params = [{pipeline_mode = #tpu.pipeline_mode<synchronous>, transform_indices = @transform_0, window_bounds = array<i64: 64, 16>}, {pipeline_mode = #tpu.pipeline_mode<synchronous>, transform_indices = @transform_1, window_bounds = array<i64: 16, 32>}, {pipeline_mode = #tpu.pipeline_mode<synchronous>, transform_indices = @transform_2, window_bounds = array<i64: 1, 32>}, {pipeline_mode = #tpu.pipeline_mode<synchronous>, transform_indices = @transform_3, window_bounds = array<i64: 32, 32>}, {pipeline_mode = #tpu.pipeline_mode<synchronous>, transform_indices = @transform_4, window_bounds = array<i64: 32, 128>}, {pipeline_mode = #tpu.pipeline_mode<synchronous>, transform_indices = @transform_5, window_bounds = array<i64: 1, 128>}, {pipeline_mode = #tpu.pipeline_mode<synchronous>, transform_indices = @transform_6, window_bounds = array<i64: 64, 128>}]} {
    %c0 = arith.constant 0 : index
    %c0_0 = arith.constant 0 : index
    %0 = vector.load %arg1[%c0, %c0_0] : memref<64x16xf32, #tpu.memory_space<vmem>>, vector<64x16xf32>
    %c0_1 = arith.constant 0 : index
    %c0_2 = arith.constant 0 : index
    %1 = vector.load %arg2[%c0_1, %c0_2] : memref<16x32xf32, #tpu.memory_space<vmem>>, vector<16x32xf32>
    %cst = arith.constant dense<0.000000e+00> : vector<64x32xf32>
    %2 = tpu.matmul %0, %1, %cst {dimension_numbers = #tpu.dot_dimension_numbers<[1], [0], [0], [1], [0, 0, 1, 1], [], []>} : vector<64x16xf32>, vector<16x32xf32>, vector<64x32xf32> -> vector<64x32xf32>
    %c0_3 = arith.constant 0 : index
    %c0_4 = arith.constant 0 : index
    %3 = vector.load %arg3[%c0_3, %c0_4] : memref<1x32xf32, #tpu.memory_space<vmem>>, vector<1x32xf32>
    %4 = vector.broadcast %3 : vector<1x32xf32> to vector<64x32xf32>
    %5 = arith.addf %2, %4 : vector<64x32xf32>
    %c0_5 = arith.constant 0 : index
    %c0_6 = arith.constant 0 : index
    %6 = vector.load %arg4[%c0_5, %c0_6] : memref<32x32xf32, #tpu.memory_space<vmem>>, vector<32x32xf32>
    %cst_7 = arith.constant 0.000000e+00 : f32
    %7 = vector.broadcast %cst_7 : f32 to vector<8x32xf32>
    %cst_8 = arith.constant 0.000000e+00 : f32
    %8 = vector.broadcast %cst_8 : f32 to vector<8x32xf32>
    %cst_9 = arith.constant dense<0.000000e+00> : vector<8x32xf32>
    %9 = tpu.matmul %7, %6, %cst_9 {dimension_numbers = #tpu.dot_dimension_numbers<[1], [0], [0], [1], [0, 0, 1, 1], [], []>} : vector<8x32xf32>, vector<32x32xf32>, vector<8x32xf32> -> vector<8x32xf32>
    %10 = vector.extract_strided_slice %5 {offsets = [0, 0], sizes = [8, 32], strides = [1, 1]} : vector<64x32xf32> to vector<8x32xf32>
    %11 = arith.addf %9, %10 : vector<8x32xf32>
    %12 = arith.negf %11 : vector<8x32xf32>
    %13 = math.exp %12 : vector<8x32xf32>
    %cst_10 = arith.constant 1.000000e+00 : f32
    %14 = vector.broadcast %cst_10 : f32 to vector<8x32xf32>
    %15 = arith.addf %14, %13 : vector<8x32xf32>
    %16 = arith.divf %14, %15 : vector<8x32xf32>
    %17 = math.tanh %11 : vector<8x32xf32>
    %18 = arith.addf %8, %17 : vector<8x32xf32>
    %19 = arith.mulf %16, %18 : vector<8x32xf32>
    %20 = math.tanh %19 : vector<8x32xf32>
    %21 = arith.mulf %16, %20 : vector<8x32xf32>
    %cst_11 = arith.constant dense<0.000000e+00> : vector<8x32xf32>
    %22 = tpu.matmul %21, %6, %cst_11 {dimension_numbers = #tpu.dot_dimension_numbers<[1], [0], [0], [1], [0, 0, 1, 1], [], []>} : vector<8x32xf32>, vector<32x32xf32>, vector<8x32xf32> -> vector<8x32xf32>
    %23 = vector.extract_strided_slice %5 {offsets = [8, 0], sizes = [8, 32], strides = [1, 1]} : vector<64x32xf32> to vector<8x32xf32>
    %24 = arith.addf %22, %23 : vector<8x32xf32>
    %25 = arith.negf %24 : vector<8x32xf32>
    %26 = math.exp %25 : vector<8x32xf32>
    %cst_12 = arith.constant 1.000000e+00 : f32
    %27 = vector.broadcast %cst_12 : f32 to vector<8x32xf32>
    %28 = arith.addf %27, %26 : vector<8x32xf32>
    %29 = arith.divf %27, %28 : vector<8x32xf32>
    %30 = math.tanh %24 : vector<8x32xf32>
    %31 = arith.addf %19, %30 : vector<8x32xf32>
    %32 = arith.mulf %29, %31 : vector<8x32xf32>
    %33 = math.tanh %32 : vector<8x32xf32>
    %34 = arith.mulf %29, %33 : vector<8x32xf32>
    %cst_13 = arith.constant dense<0.000000e+00> : vector<8x32xf32>
    %35 = tpu.matmul %34, %6, %cst_13 {dimension_numbers = #tpu.dot_dimension_numbers<[1], [0], [0], [1], [0, 0, 1, 1], [], []>} : vector<8x32xf32>, vector<32x32xf32>, vector<8x32xf32> -> vector<8x32xf32>
    %36 = vector.extract_strided_slice %5 {offsets = [16, 0], sizes = [8, 32], strides = [1, 1]} : vector<64x32xf32> to vector<8x32xf32>
    %37 = arith.addf %35, %36 : vector<8x32xf32>
    %38 = arith.negf %37 : vector<8x32xf32>
    %39 = math.exp %38 : vector<8x32xf32>
    %cst_14 = arith.constant 1.000000e+00 : f32
    %40 = vector.broadcast %cst_14 : f32 to vector<8x32xf32>
    %41 = arith.addf %40, %39 : vector<8x32xf32>
    %42 = arith.divf %40, %41 : vector<8x32xf32>
    %43 = math.tanh %37 : vector<8x32xf32>
    %44 = arith.addf %32, %43 : vector<8x32xf32>
    %45 = arith.mulf %42, %44 : vector<8x32xf32>
    %46 = math.tanh %45 : vector<8x32xf32>
    %47 = arith.mulf %42, %46 : vector<8x32xf32>
    %cst_15 = arith.constant dense<0.000000e+00> : vector<8x32xf32>
    %48 = tpu.matmul %47, %6, %cst_15 {dimension_numbers = #tpu.dot_dimension_numbers<[1], [0], [0], [1], [0, 0, 1, 1], [], []>} : vector<8x32xf32>, vector<32x32xf32>, vector<8x32xf32> -> vector<8x32xf32>
    %49 = vector.extract_strided_slice %5 {offsets = [24, 0], sizes = [8, 32], strides = [1, 1]} : vector<64x32xf32> to vector<8x32xf32>
    %50 = arith.addf %48, %49 : vector<8x32xf32>
    %51 = arith.negf %50 : vector<8x32xf32>
    %52 = math.exp %51 : vector<8x32xf32>
    %cst_16 = arith.constant 1.000000e+00 : f32
    %53 = vector.broadcast %cst_16 : f32 to vector<8x32xf32>
    %54 = arith.addf %53, %52 : vector<8x32xf32>
    %55 = arith.divf %53, %54 : vector<8x32xf32>
    %56 = math.tanh %50 : vector<8x32xf32>
    %57 = arith.addf %45, %56 : vector<8x32xf32>
    %58 = arith.mulf %55, %57 : vector<8x32xf32>
    %59 = math.tanh %58 : vector<8x32xf32>
    %60 = arith.mulf %55, %59 : vector<8x32xf32>
    %cst_17 = arith.constant dense<0.000000e+00> : vector<8x32xf32>
    %61 = tpu.matmul %60, %6, %cst_17 {dimension_numbers = #tpu.dot_dimension_numbers<[1], [0], [0], [1], [0, 0, 1, 1], [], []>} : vector<8x32xf32>, vector<32x32xf32>, vector<8x32xf32> -> vector<8x32xf32>
    %62 = vector.extract_strided_slice %5 {offsets = [32, 0], sizes = [8, 32], strides = [1, 1]} : vector<64x32xf32> to vector<8x32xf32>
    %63 = arith.addf %61, %62 : vector<8x32xf32>
    %64 = arith.negf %63 : vector<8x32xf32>
    %65 = math.exp %64 : vector<8x32xf32>
    %cst_18 = arith.constant 1.000000e+00 : f32
    %66 = vector.broadcast %cst_18 : f32 to vector<8x32xf32>
    %67 = arith.addf %66, %65 : vector<8x32xf32>
    %68 = arith.divf %66, %67 : vector<8x32xf32>
    %69 = math.tanh %63 : vector<8x32xf32>
    %70 = arith.addf %58, %69 : vector<8x32xf32>
    %71 = arith.mulf %68, %70 : vector<8x32xf32>
    %72 = math.tanh %71 : vector<8x32xf32>
    %73 = arith.mulf %68, %72 : vector<8x32xf32>
    %cst_19 = arith.constant dense<0.000000e+00> : vector<8x32xf32>
    %74 = tpu.matmul %73, %6, %cst_19 {dimension_numbers = #tpu.dot_dimension_numbers<[1], [0], [0], [1], [0, 0, 1, 1], [], []>} : vector<8x32xf32>, vector<32x32xf32>, vector<8x32xf32> -> vector<8x32xf32>
    %75 = vector.extract_strided_slice %5 {offsets = [40, 0], sizes = [8, 32], strides = [1, 1]} : vector<64x32xf32> to vector<8x32xf32>
    %76 = arith.addf %74, %75 : vector<8x32xf32>
    %77 = arith.negf %76 : vector<8x32xf32>
    %78 = math.exp %77 : vector<8x32xf32>
    %cst_20 = arith.constant 1.000000e+00 : f32
    %79 = vector.broadcast %cst_20 : f32 to vector<8x32xf32>
    %80 = arith.addf %79, %78 : vector<8x32xf32>
    %81 = arith.divf %79, %80 : vector<8x32xf32>
    %82 = math.tanh %76 : vector<8x32xf32>
    %83 = arith.addf %71, %82 : vector<8x32xf32>
    %84 = arith.mulf %81, %83 : vector<8x32xf32>
    %85 = math.tanh %84 : vector<8x32xf32>
    %86 = arith.mulf %81, %85 : vector<8x32xf32>
    %cst_21 = arith.constant dense<0.000000e+00> : vector<8x32xf32>
    %87 = tpu.matmul %86, %6, %cst_21 {dimension_numbers = #tpu.dot_dimension_numbers<[1], [0], [0], [1], [0, 0, 1, 1], [], []>} : vector<8x32xf32>, vector<32x32xf32>, vector<8x32xf32> -> vector<8x32xf32>
    %88 = vector.extract_strided_slice %5 {offsets = [48, 0], sizes = [8, 32], strides = [1, 1]} : vector<64x32xf32> to vector<8x32xf32>
    %89 = arith.addf %87, %88 : vector<8x32xf32>
    %90 = arith.negf %89 : vector<8x32xf32>
    %91 = math.exp %90 : vector<8x32xf32>
    %cst_22 = arith.constant 1.000000e+00 : f32
    %92 = vector.broadcast %cst_22 : f32 to vector<8x32xf32>
    %93 = arith.addf %92, %91 : vector<8x32xf32>
    %94 = arith.divf %92, %93 : vector<8x32xf32>
    %95 = math.tanh %89 : vector<8x32xf32>
    %96 = arith.addf %84, %95 : vector<8x32xf32>
    %97 = arith.mulf %94, %96 : vector<8x32xf32>
    %98 = math.tanh %97 : vector<8x32xf32>
    %99 = arith.mulf %94, %98 : vector<8x32xf32>
    %cst_23 = arith.constant dense<0.000000e+00> : vector<8x32xf32>
    %100 = tpu.matmul %99, %6, %cst_23 {dimension_numbers = #tpu.dot_dimension_numbers<[1], [0], [0], [1], [0, 0, 1, 1], [], []>} : vector<8x32xf32>, vector<32x32xf32>, vector<8x32xf32> -> vector<8x32xf32>
    %101 = vector.extract_strided_slice %5 {offsets = [56, 0], sizes = [8, 32], strides = [1, 1]} : vector<64x32xf32> to vector<8x32xf32>
    %102 = arith.addf %100, %101 : vector<8x32xf32>
    %103 = arith.negf %102 : vector<8x32xf32>
    %104 = math.exp %103 : vector<8x32xf32>
    %cst_24 = arith.constant 1.000000e+00 : f32
    %105 = vector.broadcast %cst_24 : f32 to vector<8x32xf32>
    %106 = arith.addf %105, %104 : vector<8x32xf32>
    %107 = arith.divf %105, %106 : vector<8x32xf32>
    %108 = math.tanh %102 : vector<8x32xf32>
    %109 = arith.addf %97, %108 : vector<8x32xf32>
    %110 = arith.mulf %107, %109 : vector<8x32xf32>
    %111 = math.tanh %110 : vector<8x32xf32>
    %112 = arith.mulf %107, %111 : vector<8x32xf32>
    %113 = tpu.concatenate %21, %34, %47, %60, %73, %86, %99, %112 in 0 : vector<8x32xf32>, vector<8x32xf32>, vector<8x32xf32>, vector<8x32xf32>, vector<8x32xf32>, vector<8x32xf32>, vector<8x32xf32>, vector<8x32xf32> -> vector<64x32xf32>
    %c0_25 = arith.constant 0 : index
    %c0_26 = arith.constant 0 : index
    %114 = vector.load %arg5[%c0_25, %c0_26] : memref<32x128xf32, #tpu.memory_space<vmem>>, vector<32x128xf32>
    %cst_27 = arith.constant dense<0.000000e+00> : vector<64x128xf32>
    %115 = tpu.matmul %113, %114, %cst_27 {dimension_numbers = #tpu.dot_dimension_numbers<[1], [0], [0], [1], [0, 0, 1, 1], [], []>} : vector<64x32xf32>, vector<32x128xf32>, vector<64x128xf32> -> vector<64x128xf32>
    %c0_28 = arith.constant 0 : index
    %c0_29 = arith.constant 0 : index
    %116 = vector.load %arg6[%c0_28, %c0_29] : memref<1x128xf32, #tpu.memory_space<vmem>>, vector<1x128xf32>
    %117 = vector.broadcast %116 : vector<1x128xf32> to vector<64x128xf32>
    %118 = arith.addf %115, %117 : vector<64x128xf32>
    %c0_30 = arith.constant 0 : index
    %c0_31 = arith.constant 0 : index
    %119 = vector.load %arg7[%c0_30, %c0_31] : memref<64x128xf32, #tpu.memory_space<vmem>>, vector<64x128xf32>
    tpu.vector_store %arg7[%c0_30, %c0_31], %118 {strides = array<i32>} : memref<64x128xf32, #tpu.memory_space<vmem>>, vector<64x128xf32>,
    return
  }
  func.func @transform_0(%arg0: i32) -> (i32, i32) {
    %c0_i32 = arith.constant 0 : i32
    %c0_i32_0 = arith.constant 0 : i32
    %c0_i32_1 = arith.constant 0 : i32
    return %c0_i32, %c0_i32_0 : i32, i32
  }
  func.func @transform_1(%arg0: i32) -> (i32, i32) {
    %c0_i32 = arith.constant 0 : i32
    %c0_i32_0 = arith.constant 0 : i32
    %c0_i32_1 = arith.constant 0 : i32
    return %c0_i32, %c0_i32_0 : i32, i32
  }
  func.func @transform_2(%arg0: i32) -> (i32, i32) {
    %c0_i32 = arith.constant 0 : i32
    %c0_i32_0 = arith.constant 0 : i32
    %c0_i32_1 = arith.constant 0 : i32
    return %c0_i32, %c0_i32_0 : i32, i32
  }
  func.func @transform_3(%arg0: i32) -> (i32, i32) {
    %c0_i32 = arith.constant 0 : i32
    %c0_i32_0 = arith.constant 0 : i32
    %c0_i32_1 = arith.constant 0 : i32
    return %c0_i32, %c0_i32_0 : i32, i32
  }
  func.func @transform_4(%arg0: i32) -> (i32, i32) {
    %c0_i32 = arith.constant 0 : i32
    %c0_i32_0 = arith.constant 0 : i32
    %c0_i32_1 = arith.constant 0 : i32
    return %c0_i32, %c0_i32_0 : i32, i32
  }
  func.func @transform_5(%arg0: i32) -> (i32, i32) {
    %c0_i32 = arith.constant 0 : i32
    %c0_i32_0 = arith.constant 0 : i32
    %c0_i32_1 = arith.constant 0 : i32
    return %c0_i32, %c0_i32_0 : i32, i32
  }
  func.func @transform_6(%arg0: i32) -> (i32, i32) {
    %c0_i32 = arith.constant 0 : i32
    %c0_i32_0 = arith.constant 0 : i32
    %c0_i32_1 = arith.constant 0 : i32
    return %c0_i32, %c0_i32_0 : i32, i32
  }
}

</mosaic_0001>

<bundles_post_ra>
// kernel: tpu_custom_call.1
= control target key start
LH: loop header
LB: loop body
LE: loop exit
PB: predicated region body
PF: predicated region fallthrough
CT: control target
= control target key end

     0   :  { %vm41_vm0 = vcmask 130048   ;;  %s1558_s0 = inlined_call_operand.vmem [shape: f32[64,16], index: 0, kind: input, shape index: {}]   ;;  %s1559_s1 = inlined_call_operand.vmem [shape: f32[16,32], index: 1, kind: input, shape index: {}]   ;;  %s1560_s2 = inlined_call_operand.vmem [shape: f32[1,32], index: 2, kind: input, shape index: {}]   ;;  %s1561_s3 = inlined_call_operand.vmem [shape: f32[32,32], index: 3, kind: input, shape index: {}]   ;;  %s1562_s4 = inlined_call_operand.vmem [shape: f32[32,128], index: 4, kind: input, shape index: {}]   ;;  %s1563_s5 = inlined_call_operand.vmem [shape: f32[1,128], index: 5, kind: input, shape index: {}]   ;;  %s1564_s6 = inlined_call_operand.hbm [shape: f32[64,128], index: 6, kind: output, shape index: {}]  }
   0x1   :  { %v33_v0 = vld [vmem:[%s1559_s1 + $0x8] sm:$0xff]  ;;  %v32_v1 = vld [vmem:[%s1559_s1] sm:$0xff]  ;;  %v1361_v4 = vld [vmem:[%s1561_s3 + $0x18] sm:$0xff] }
   0x2   :  { %v28_v2 = vld [vmem:[%s1558_s0 + $0x20] sm:$0xff]  ;;  %1210 = vmatprep.subr.mxu1 %v33_v0  ;;  %1086 = vmatprep.subr.mxu0 %v33_v0  ;;  %v29_v3 = vld [vmem:[%s1558_s0 + $0x28] sm:$0xff] }
   0x3   :  { %1212 = vmatpush3.msra.mxu1 %v33_v0  ;;  %1096 = vmatprep.mubr.msk.f32.mxu1 %vm41_vm0, %v28_v2  ;;  %v24_v5 = vld [vmem:[%s1558_s0] sm:$0xff] }
   0x4   :  { %1211 = vmatprep.subr.mxu1 %v32_v1  ;;  %1087 = vmatpush3.msra.mxu0 %v33_v0 }
   0x5   :  { %1213 = vmatpush3.msra.mxu1 %v32_v1  ;;  %1088 = vmatprep.subr.mxu0 %v32_v1 }
   0x6   :  { %11 = vsyncpa [#allocation3], 0  ;;  %1097 = vmatmul.mubr.msk.f32.vlgmr.msra.gmra.mxu1 %vm41_vm0, %v29_v3  ;;  %v1305_v6 = vmov 0.0   ;;  %v25_v7 = vld [vmem:[%s1558_s0 + $0x8] sm:$0xff]  ;;  %v30_v8 = vld [vmem:[%s1558_s0 + $0x30] sm:$0xff]  ;;  %1089 = vmatpush3.msra.mxu0 %v32_v1  ;;  %vm1306_vm1 = vmmov 0  }
   0x7   :  { %1102 = vmatprep.subr.mxu1 %v1305_v6  ;;  %v1378_v9 = vld [vmem:[%s1561_s3 + $0x10] sm:$0xff]  ;;  %1090 = vmatprep.mubr.msk.f32.mxu0 %vm41_vm0, %v24_v5  ;;  %v31_v10 = vld [vmem:[%s1558_s0 + $0x38] sm:$0xff]  ;;  %v1390_v11 = vld [vmem:[%s1561_s3 + $0x8] sm:$0xff]  ;;  %vm175_vm2 = vcmask 261120  }
   0x8   :  { %1103 = vmatpush3.msra.mxu1 %v1361_v4  ;;  %1091 = vmatmul.mubr.msk.f32.vlgmr.msra.gmra.mxu0 %vm41_vm0, %v25_v7  ;;  %v1399_v12 = vld [vmem:[%s1561_s3] sm:$0xff]  ;;  %v26_v32 = vld [vmem:[%s1558_s0 + $0x10] sm:$0xff]  ;;  %v27_v33 = vld [vmem:[%s1558_s0 + $0x18] sm:$0xff] }
   0x9   :  { %1104 = vmatprep.subr.mxu1 %v1305_v6  ;;  %1099 = vmatprep.mubr.msk.f32.mxu1 %vm41_vm0, %v30_v8  ;;  %v1435_v18 = vld [vmem:[%s1560_s2] ss:$0 sm:$0xff] }
   0xa   :  { %1105 = vmatpush3.msra.mxu1 %v1378_v9  ;;  %1124 = vmatprep.subr.mxu0 %v1305_v6 }
   0xb   :  { %1100 = vmatmul.mubr.msk.f32.gmra.mxu1 %vm41_vm0, %v31_v10  ;;  %1106 = vmatprep.subr.mxu1 %v1305_v6 }
   0xc   :  { %1107 = vmatpush3.msra.mxu1 %v1390_v11  ;;  %1110 = vmatprep.mubr.msk.f32.mxu1 %vm1306_vm1, %v1305_v6 }
   0xd   :  { %1108 = vmatprep.subr.mxu1 %v1305_v6  ;;  %1125 = vmatpush3.msra.mxu0 %v1361_v4 }
   0xe   :  { %1109 = vmatpush3.msra.mxu1 %v1399_v12  ;;  %1126 = vmatprep.subr.mxu0 %v1305_v6 }
   0xf   :  { %1111 = vmatmul.mubr.f32.vlgmr.msra.gmra.mxu1 %v1305_v6  ;;  %1113 = vmatprep.subr.mxu1 %v1305_v6 }
  0x10   :  { %1114 = vmatpush3.msra.mxu1 %v1361_v4  ;;  %1121 = vmatprep.mubr.msk.f32.mxu1 %vm1306_vm1, %v1305_v6 }
  0x11   :  { %1115 = vmatprep.subr.mxu1 %v1305_v6  ;;  %1127 = vmatpush3.msra.mxu0 %v1378_v9 }
  0x12   :  { %1116 = vmatpush3.msra.mxu1 %v1378_v9  ;;  %1128 = vmatprep.subr.mxu0 %v1305_v6 }
  0x13   :  { %1117 = vmatprep.subr.mxu1 %v1305_v6  ;;  %1129 = vmatpush3.msra.mxu0 %v1390_v11 }
  0x14   :  { %1118 = vmatpush3.msra.mxu1 %v1390_v11  ;;  %1130 = vmatprep.subr.mxu0 %v1305_v6 }
  0x15   :  { %1119 = vmatprep.subr.mxu1 %v1305_v6  ;;  %1131 = vmatpush3.msra.mxu0 %v1399_v12 }
  0x16   :  { %1120 = vmatpush3.msra.mxu1 %v1399_v12  ;;  %1146 = vmatprep.subr.mxu0 %v1305_v6 }
  0x17   :  { %1135 = vmatprep.subr.mxu1 %v1305_v6  ;;  %1093 = vmatprep.mubr.msk.f32.mxu0 %vm41_vm0, %v26_v32 }
  0x18   :  { %1094 = vmatmul.mubr.msk.f32.gmra.mxu0 %vm41_vm0, %v27_v33 }
  0x19   :  { %1132 = vmatprep.mubr.msk.f32.mxu0 %vm1306_vm1, %v1305_v6 }
  0xc6   :  { %v1426_v13 = vpop.f32.mrf.mxu1 }
  0xc8   :  { %v1428_v14 = vpop.f32.mrf.mxu1  ;;  %v1092_v15 = vpop.f32.mrf.mxu0 }
  0xc9   :  { %v138_v34 = vadd.f32 %v1092_v15, %v1435_v18 }
  0xca   :  { %v132_v17 = vpop.f32.mrf.mxu0 }
  0xcb   :  { %v1430_v16 = vpop.f32.mrf.mxu1  ;;  %v133_v20 = vadd.f32 %v1435_v18, %v132_v17 }
  0xcd   :  { %v1437_v19 = vpop.f32.mrf.mxu1 }
  0xcf   :  { %v245_v21 = vpop.f32.mrf.mxu1 }
  0xd0   :  { %v246_v22 = vadd.f32 %v245_v21, %v133_v20  ;;  %v153_v21 = vadd.f32 %v1435_v18, %v1428_v14  ;;  %v851_v14 = vld [vmem:[%s1562_s4 + $0x18] sm:$0xff] }
  0xd1   :  { %v1112_v23 = vpop.f32.mrf.mxu1 }
  0xd2   :  { %v1000_v24 = vmul.f32 -1.442695, %v246_v22 }
  0xd4   :  { %1219 = vpow2.f32 %v1000_v24 }
  0xd5   :  { %1221 = vtanh.f32 %v246_v22 }
  0xd8   :  { %v1095_v47 = vpop.f32.mrf.mxu0 }
  0xd9   :  { %v148_v62 = vadd.f32 %v1095_v47, %v1435_v18 }
  0xda   :  { %v142_v48 = vpop.f32.mrf.mxu0 }
  0xdb   :  { %v143_v49 = vadd.f32 %v1435_v18, %v142_v48 }
  0xe1   :  { %v1220_v25 = vpop.eup %1219 }
  0xe2   :  { %v252_v26 = vadd.f32 1.0, %v1220_v25  ;;  %v1222_v27 = vpop.eup %1221 }
  0xe4   :  { %1223 = vrcp.f32 %v252_v26 }
  0xf1   :  { %v1224_v28 = vpop.eup %1223 }
  0xf2   :  { %v257_v29 = vmul.f32 %v1224_v28, %v1222_v27 }
  0xf4   :  { %1225 = vtanh.f32 %v257_v29 }
 0x101   :  { %v1226_v30 = vpop.eup %1225 }
 0x102   :  { %v1440_v31 = vmul.f32 %v1226_v30, %v1224_v28 }
 0x104   :  { %1122 = vmatmul.mubr.msk.f32.vlgmr.msra.gmra.mxu1 %vm175_vm2, %v1440_v31 }
 0x105   :  { %1136 = vmatpush3.msra.mxu1 %v1361_v4  ;;  %1143 = vmatprep.mubr.msk.f32.mxu1 %vm1306_vm1, %v1305_v6 }
 0x106   :  { %1137 = vmatprep.subr.mxu1 %v1305_v6 }
 0x107   :  { %1138 = vmatpush3.msra.mxu1 %v1378_v9 }
 0x108   :  { %1139 = vmatprep.subr.mxu1 %v1305_v6 }
 0x109   :  { %1140 = vmatpush3.msra.mxu1 %v1390_v11 }
 0x10a   :  { %1141 = vmatprep.subr.mxu1 %v1305_v6 }
 0x10b   :  { %1142 = vmatpush3.msra.mxu1 %v1399_v12 }
 0x10c   :  { %1157 = vmatprep.subr.mxu1 %v1305_v6 }
 0x1c4   :  { %v329_v35 = vpop.f32.mrf.mxu1 }
 0x1c5   :  { %v330_v36 = vadd.f32 %v329_v35, %v138_v34 }
 0x1c6   :  { %v1123_v37 = vpop.f32.mrf.mxu1 }
 0x1c7   :  { %v1002_v38 = vmul.f32 -1.442695, %v330_v36 }
 0x1c9   :  { %1227 = vpow2.f32 %v1002_v38 }
 0x1ca   :  { %1229 = vtanh.f32 %v330_v36 }
 0x1d6   :  { %v1228_v39 = vpop.eup %1227 }
 0x1d7   :  { %v336_v40 = vadd.f32 1.0, %v1228_v39  ;;  %v1230_v41 = vpop.eup %1229 }
 0x1d8   :  { %v340_v42 = vadd.f32 %v1230_v41, %v257_v29 }
 0x1d9   :  { %1231 = vrcp.f32 %v336_v40 }
 0x1e6   :  { %v1232_v43 = vpop.eup %1231 }
 0x1e7   :  { %v341_v44 = vmul.f32 %v1232_v43, %v340_v42 }
 0x1e9   :  { %1233 = vtanh.f32 %v341_v44 }
 0x1f6   :  { %v1234_v45 = vpop.eup %1233 }
 0x1f7   :  { %v1465_v46 = vmul.f32 %v1234_v45, %v1232_v43  ;;  %v849_v43 = vld [vmem:[%s1562_s4 + $0x8] sm:$0xff] }
 0x1f9   :  { %1133 = vmatmul.mubr.msk.f32.vlgmr.msra.gmra.mxu0 %vm175_vm2, %v1465_v46 }
 0x1fa   :  { %1147 = vmatpush3.msra.mxu0 %v1361_v4  ;;  %1154 = vmatprep.mubr.msk.f32.mxu0 %vm1306_vm1, %v1305_v6 }
 0x1fb   :  { %1148 = vmatprep.subr.mxu0 %v1305_v6 }
 0x1fc   :  { %1149 = vmatpush3.msra.mxu0 %v1378_v9 }
 0x1fd   :  { %1150 = vmatprep.subr.mxu0 %v1305_v6 }
 0x1fe   :  { %1151 = vmatpush3.msra.mxu0 %v1390_v11 }
 0x1ff   :  { %1152 = vmatprep.subr.mxu0 %v1305_v6 }
 0x200   :  { %1153 = vmatpush3.msra.mxu0 %v1399_v12 }
 0x201   :  { %1168 = vmatprep.subr.mxu0 %v1305_v6 }
 0x2b9   :  { %v413_v50 = vpop.f32.mrf.mxu0 }
 0x2ba   :  { %v414_v51 = vadd.f32 %v413_v50, %v143_v49 }
 0x2bb   :  { %v1134_v52 = vpop.f32.mrf.mxu0 }
 0x2bc   :  { %v1004_v53 = vmul.f32 -1.442695, %v414_v51 }
 0x2be   :  { %1235 = vpow2.f32 %v1004_v53 }
 0x2bf   :  { %1237 = vtanh.f32 %v414_v51 }
 0x2cb   :  { %v1236_v54 = vpop.eup %1235 }
 0x2cc   :  { %v420_v55 = vadd.f32 1.0, %v1236_v54  ;;  %v1238_v56 = vpop.eup %1237 }
 0x2cd   :  { %v424_v57 = vadd.f32 %v1238_v56, %v341_v44  ;;  %v848_v44 = vld [vmem:[%s1562_s4] sm:$0xff] }
 0x2ce   :  { %1239 = vrcp.f32 %v420_v55 }
 0x2db   :  { %v1240_v58 = vpop.eup %1239 }
 0x2dc   :  { %v425_v59 = vmul.f32 %v1240_v58, %v424_v57 }
 0x2de   :  { %1241 = vtanh.f32 %v425_v59 }
 0x2eb   :  { %v1242_v60 = vpop.eup %1241 }
 0x2ec   :  { %v1480_v61 = vmul.f32 %v1242_v60, %v1240_v58 }
 0x2ee   :  { %1144 = vmatmul.mubr.msk.f32.vlgmr.msra.gmra.mxu1 %vm175_vm2, %v1480_v61 }
 0x2ef   :  { %1158 = vmatpush3.msra.mxu1 %v1361_v4  ;;  %1165 = vmatprep.mubr.msk.f32.mxu1 %vm1306_vm1, %v1305_v6 }
 0x2f0   :  { %1159 = vmatprep.subr.mxu1 %v1305_v6 }
 0x2f1   :  { %1160 = vmatpush3.msra.mxu1 %v1378_v9 }
 0x2f2   :  { %1161 = vmatprep.subr.mxu1 %v1305_v6 }
 0x2f3   :  { %1162 = vmatpush3.msra.mxu1 %v1390_v11 }
 0x2f4   :  { %1163 = vmatprep.subr.mxu1 %v1305_v6 }
 0x2f5   :  { %1164 = vmatpush3.msra.mxu1 %v1399_v12 }
 0x2f6   :  { %1179 = vmatprep.subr.mxu1 %v1305_v6 }
 0x3ae   :  { %v497_v63 = vpop.f32.mrf.mxu1 }
 0x3af   :  { %v498_v0 = vadd.f32 %v497_v63, %v148_v62 }
 0x3b0   :  { %v1145_v1 = vpop.f32.mrf.mxu1 }
 0x3b1   :  { %v1006_v2 = vmul.f32 -1.442695, %v498_v0 }
 0x3b3   :  { %1243 = vpow2.f32 %v1006_v2 }
 0x3b4   :  { %1245 = vtanh.f32 %v498_v0 }
 0x3c0   :  { %v1244_v3 = vpop.eup %1243 }
 0x3c1   :  { %v504_v5 = vadd.f32 1.0, %v1244_v3  ;;  %v1246_v7 = vpop.eup %1245 }
 0x3c2   :  { %v508_v8 = vadd.f32 %v1246_v7, %v425_v59  ;;  %v168_v7 = vadd.f32 %v1430_v16, %v1435_v18 }
 0x3c3   :  { %1247 = vrcp.f32 %v504_v5 }
 0x3d0   :  { %v1248_v10 = vpop.eup %1247 }
 0x3d1   :  { %v509_v15 = vmul.f32 %v1248_v10, %v508_v8 }
 0x3d3   :  { %1249 = vtanh.f32 %v509_v15 }
 0x3e0   :  { %v1250_v17 = vpop.eup %1249 }
 0x3e1   :  { %v1495_v20 = vmul.f32 %v1250_v17, %v1248_v10 }
 0x3e3   :  { %1155 = vmatmul.mubr.msk.f32.vlgmr.msra.gmra.mxu0 %vm175_vm2, %v1495_v20 }
 0x3e4   :  { %1169 = vmatpush3.msra.mxu0 %v1361_v4  ;;  %1176 = vmatprep.mubr.msk.f32.mxu0 %vm1306_vm1, %v1305_v6 }
 0x3e5   :  { %1170 = vmatprep.subr.mxu0 %v1305_v6 }
 0x3e6   :  { %1171 = vmatpush3.msra.mxu0 %v1378_v9 }
 0x3e7   :  { %1172 = vmatprep.subr.mxu0 %v1305_v6 }
 0x3e8   :  { %1173 = vmatpush3.msra.mxu0 %v1390_v11 }
 0x3e9   :  { %1174 = vmatprep.subr.mxu0 %v1305_v6 }
 0x3ea   :  { %1175 = vmatpush3.msra.mxu0 %v1399_v12 }
 0x3eb   :  { %1190 = vmatprep.subr.mxu0 %v851_v14 }
 0x4a3   :  { %v581_v22 = vpop.f32.mrf.mxu0 }
 0x4a4   :  { %v582_v23 = vadd.f32 %v581_v22, %v153_v21 }
 0x4a5   :  { %v1156_v24 = vpop.f32.mrf.mxu0 }
 0x4a6   :  { %v1008_v25 = vmul.f32 -1.442695, %v582_v23 }
 0x4a8   :  { %1251 = vpow2.f32 %v1008_v25 }
 0x4a9   :  { %1253 = vtanh.f32 %v582_v23 }
 0x4b5   :  { %v1252_v26 = vpop.eup %1251 }
 0x4b6   :  { %v588_v27 = vadd.f32 1.0, %v1252_v26  ;;  %v1254_v28 = vpop.eup %1253 }
 0x4b7   :  { %v592_v29 = vadd.f32 %v1254_v28, %v509_v15 }
 0x4b8   :  { %1255 = vrcp.f32 %v588_v27 }
 0x4c5   :  { %v1256_v30 = vpop.eup %1255 }
 0x4c6   :  { %v593_v32 = vmul.f32 %v1256_v30, %v592_v29 }
 0x4c8   :  { %1257 = vtanh.f32 %v593_v32 }
 0x4d5   :  { %v1258_v33 = vpop.eup %1257 }
 0x4d6   :  { %v595_v34 = vmul.f32 %v1258_v33, %v1256_v30 }
 0x4d8   :  { %1166 = vmatmul.mubr.msk.f32.vlgmr.msra.gmra.mxu1 %vm175_vm2, %v595_v34 }
 0x4d9   :  { %1180 = vmatpush3.msra.mxu1 %v1361_v4  ;;  %1187 = vmatprep.mubr.msk.f32.mxu1 %vm1306_vm1, %v1305_v6  ;;  %v158_v4 = vadd.f32 %v1426_v13, %v1435_v18  ;;  %v850_v13 = vld [vmem:[%s1562_s4 + $0x10] sm:$0xff] }
 0x4da   :  { %1181 = vmatprep.subr.mxu1 %v1305_v6 }
 0x4db   :  { %1182 = vmatpush3.msra.mxu1 %v1378_v9 }
 0x4dc   :  { %1183 = vmatprep.subr.mxu1 %v1305_v6 }
 0x4dd   :  { %1184 = vmatpush3.msra.mxu1 %v1390_v11 }
 0x4de   :  { %1185 = vmatprep.subr.mxu1 %v1305_v6 }
 0x4df   :  { %1186 = vmatpush3.msra.mxu1 %v1399_v12 }
 0x598   :  { %v665_v35 = vpop.f32.mrf.mxu1 }
 0x599   :  { %v666_v36 = vadd.f32 %v665_v35, %v158_v4 }
 0x59a   :  { %v1167_v37 = vpop.f32.mrf.mxu1 }
 0x59b   :  { %v1010_v9 = vmul.f32 -1.442695, %v666_v36 }
 0x59d   :  { %1259 = vpow2.f32 %v1010_v9 }
 0x59e   :  { %1261 = vtanh.f32 %v666_v36 }
 0x5aa   :  { %v1260_v38 = vpop.eup %1259 }
 0x5ab   :  { %v672_v11 = vadd.f32 1.0, %v1260_v38  ;;  %v1262_v6 = vpop.eup %1261 }
 0x5ac   :  { %v676_v39 = vadd.f32 %v1262_v6, %v593_v32 }
 0x5ad   :  { %1263 = vrcp.f32 %v672_v11 }
 0x5ba   :  { %v1264_v12 = vpop.eup %1263 }
 0x5bb   :  { %v677_v40 = vmul.f32 %v1264_v12, %v676_v39 }
 0x5bd   :  { %1265 = vtanh.f32 %v677_v40 }
 0x5ca   :  { %v1266_v41 = vpop.eup %1265 }
 0x5cb   :  { %v679_v42 = vmul.f32 %v1266_v41, %v1264_v12 }
 0x5cd   :  { %1177 = vmatmul.mubr.msk.f32.vlgmr.msra.gmra.mxu0 %vm175_vm2, %v679_v42 }
 0x5ce   :  { %1191 = vmatpush3.msra.mxu0 %v851_v14  ;;  %1198 = vmatprep.mubr.msk.f32.mxu0 %vm175_vm2, %v1440_v31  ;;  %v163_v31 = vadd.f32 %v1435_v18, %v1437_v19 }
 0x5cf   :  { %1192 = vmatprep.subr.mxu0 %v850_v13 }
 0x5d0   :  { %1193 = vmatpush3.msra.mxu0 %v850_v13 }
 0x5d1   :  { %1194 = vmatprep.subr.mxu0 %v849_v43 }
 0x5d2   :  { %1195 = vmatpush3.msra.mxu0 %v849_v43 }
 0x5d3   :  { %1196 = vmatprep.subr.mxu0 %v848_v44 }
 0x5d4   :  { %1197 = vmatpush3.msra.mxu0 %v848_v44 }
 0x5d5   :  { %1199 = vmatmul.mubr.msk.f32.vlgmr.msra.gmra.mxu0 %vm175_vm2, %v1465_v46  ;;  %v1015_v46 = vld [vmem:[%s1563_s5] ss:$0 sm:$0xff]  ;;  %s1307_s5 = smov [#allocation2]  }
 0x5d6   :  { %1201 = vmatprep.mubr.msk.f32.mxu0 %vm175_vm2, %v1480_v61  ;;  %s980_s7 = sshll.u32 %s1307_s5, 4  ;;  %s981_s7 = int_to_ptr.vmem [resolvable:$true] %s980_s7 }
 0x5d7   :  { %s1283_s8 = scalar_lea.vmem %s981_s7, 1024  ;;  %p1288_p1 = scmp.lt.s32.totalorder %s981_s7, %s981_s7 }
 0x5d8   :  { %p1284_p0 = scmp.ne.s32.totalorder %s981_s7, %s1283_s8  ;;  %p1289_p2 = scmp.lt.s32.totalorder %s1283_s8, %s1283_s8 }
 0x5d9   :  { %1202 = vmatmul.mubr.msk.f32.gmra.mxu0 %vm175_vm2, %v1495_v20 }
 0x5da   :  { %1204 = vmatprep.mubr.msk.f32.mxu0 %vm175_vm2, %v595_v34  ;;  %p1290_p3 = por %p1289_p2, %p1288_p1 }
 0x5dc   :  { %p1291_p4 = pnand %p1290_p3, %p1284_p0 }
 0x5dd   :  { %1205 = vmatmul.mubr.msk.f32.gmra.mxu0 %vm175_vm2, %v679_v42 }
 0x68d   :  { %v749_v45 = vpop.f32.mrf.mxu0 }
 0x68e   :  { %v750_v47 = vadd.f32 %v749_v45, %v163_v31 }
 0x68f   :  { %v1178_v48 = vpop.f32.mrf.mxu0 }
 0x690   :  { %v1012_v49 = vmul.f32 -1.442695, %v750_v47 }
 0x692   :  { %1267 = vpow2.f32 %v1012_v49 }
 0x693   :  { %1269 = vtanh.f32 %v750_v47 }
 0x695   :  { %v1200_v50 = vpop.f32.mrf.mxu0 }
 0x696   :  { %v934_v51 = vadd.f32 %v1200_v50, %v1015_v46 }
 0x697   :  { %v928_v52 = vpop.f32.mrf.mxu0 }
 0x698   :  { %968 = vst [vmem:[#allocation2 + $0x8] sm:$0xff] %v934_v51  ;;  %v929_v53 = vadd.f32 %v1015_v46, %v928_v52 }
 0x699   :  { %v1203_v54 = vpop.f32.mrf.mxu0 }
 0x69a   :  { %967 = vst [vmem:[#allocation2] sm:$0xff] %v929_v53  ;;  %v944_v55 = vadd.f32 %v1203_v54, %v1015_v46 }
 0x69b   :  { %v938_v56 = vpop.f32.mrf.mxu0 }
 0x69c   :  { %970 = vst [vmem:[#allocation2 + $0x18] sm:$0xff] %v944_v55  ;;  %v939_v19 = vadd.f32 %v1015_v46, %v938_v56 }
 0x69d   :  { %v1206_v57 = vpop.f32.mrf.mxu0 }
 0x69e   :  { %969 = vst [vmem:[#allocation2 + $0x10] sm:$0xff] %v939_v19  ;;  %v954_v58 = vadd.f32 %v1206_v57, %v1015_v46 }
 0x69f   :  { %v1268_v59 = vpop.eup %1267  ;;  %v948_v60 = vpop.f32.mrf.mxu0 }
 0x6a0   :  { %v756_v61 = vadd.f32 1.0, %v1268_v59  ;;  %972 = vst [vmem:[#allocation2 + $0x28] sm:$0xff] %v954_v58  ;;  %v949_v62 = vadd.f32 %v1015_v46, %v948_v60  ;;  %v1270_v63 = vpop.eup %1269 }
 0x6a1   :  { %v760_v0 = vadd.f32 %v1270_v63, %v677_v40 }
 0x6a2   :  { %1271 = vrcp.f32 %v756_v61  ;;  %971 = vst [vmem:[#allocation2 + $0x20] sm:$0xff] %v949_v62 }
 0x6af   :  { %v1272_v1 = vpop.eup %1271 }
 0x6b0   :  { %v761_v2 = vmul.f32 %v1272_v1, %v760_v0 }
 0x6b2   :  { %1273 = vtanh.f32 %v761_v2 }
 0x6bf   :  { %v1274_v3 = vpop.eup %1273 }
 0x6c0   :  { %v763_v5 = vmul.f32 %v1274_v3, %v1272_v1 }
 0x6c2   :  { %1188 = vmatmul.mubr.msk.f32.vlgmr.msra.gmra.mxu1 %vm175_vm2, %v763_v5  ;;  %1207 = vmatprep.mubr.msk.f32.mxu0 %vm175_vm2, %v763_v5 }
 0x782   :  { %v833_v8 = vpop.f32.mrf.mxu1 }
 0x783   :  { %v834_v10 = vadd.f32 %v833_v8, %v168_v7 }
 0x784   :  { %v1189_v15 = vpop.f32.mrf.mxu1 }
 0x785   :  { %v1014_v17 = vmul.f32 -1.442695, %v834_v10 }
 0x787   :  { %1275 = vpow2.f32 %v1014_v17 }
 0x788   :  { %1277 = vtanh.f32 %v834_v10 }
 0x794   :  { %v1276_v20 = vpop.eup %1275 }
 0x795   :  { %v840_v21 = vadd.f32 1.0, %v1276_v20  ;;  %v1278_v22 = vpop.eup %1277 }
 0x796   :  { %v844_v23 = vadd.f32 %v1278_v22, %v761_v2 }
 0x797   :  { %1279 = vrcp.f32 %v840_v21 }
 0x7a4   :  { %v1280_v24 = vpop.eup %1279 }
 0x7a5   :  { %v845_v25 = vmul.f32 %v1280_v24, %v844_v23 }
 0x7a7   :  { %1281 = vtanh.f32 %v845_v25 }
 0x7b4   :  { %v1282_v26 = vpop.eup %1281 }
 0x7b5   :  { %v847_v27 = vmul.f32 %v1282_v26, %v1280_v24 }
 0x7b7   :  { %1208 = vmatmul.mubr.msk.f32.gmra.mxu0 %vm175_vm2, %v847_v27 }
 0x877   :  { %v1209_v28 = vpop.f32.mrf.mxu0 }
 0x878   :  { %v964_v16 = vadd.f32 %v1209_v28, %v1015_v46 }
 0x879   :  { %v958_v18 = vpop.f32.mrf.mxu0 }
 0x87a   :  { %974 = vst [vmem:[#allocation2 + $0x38] sm:$0xff] %v964_v16  ;;  %v959_v29 = vadd.f32 %v1015_v46, %v958_v18 }
 0x87c   :  { %973 = vst [vmem:[#allocation2 + $0x30] sm:$0xff] %v959_v29 }
 0x87d   :  { %1294 = shalt.err (!%p1291_p4)
}
 0x87e   :  { %s1308_s9 = smov 128   ;;  %s1309_s10 = smov 8  }
 0x87f   :  { %986 = dma.vmem_to_hbm [thread:$0]  %s981_s7, 1024, %s1564_s6, [#allocation3], %s1308_s9, %s1308_s9, %s1309_s10  }
 0x880   :  { %1303 = dma.done.wait [#allocation3], 1024  }
 0x881   :  { %1304 = vsyncadd [#allocation3], 4294966272 }
 0x882   :  { %990 = vsyncpa [#allocation3], 1 }

</bundles_post_ra>
